<compile_context>
chip_gen: v7x
topology: tpu7x:2x2x1
jax: 0.10.0
libtpu: 0.0.40
codegen_flags: <defaults>
</compile_context>

<pallas_src>
import functools

import jax
import jax.numpy as jnp
from jax.experimental import pallas as pl
from jax.experimental.pallas import tpu as pltpu


def _moments_kernel(x_ref, sum_ref, xtx_ref):
    """Accumulate column sums and X^T X over N-tiles (reduction grid axis)."""
    i = pl.program_id(0)

    @pl.when(i == 0)
    def _():
        sum_ref[...] = jnp.zeros_like(sum_ref)
        xtx_ref[...] = jnp.zeros_like(xtx_ref)

    x = x_ref[...]                                        # (tile_n, D) f32
    sum_ref[...] += jnp.sum(x, axis=0, keepdims=True)     # (1, D)
    xtx_ref[...] += jnp.einsum("nd,ne->de", x, x,
                               preferred_element_type=jnp.float32)


def _whiten_kernel(x_ref, mean_ref, w_ref, y_ref):
    """y = (x - mean) @ W_blockdiag  -- one lane-dense MXU matmul per tile."""
    xc = x_ref[...] - mean_ref[...]                       # (tile_n, D)
    # NOTE: on v6e/v7x xc / W could be cast to bf16 here (f32 accumulation via
    # preferred_element_type) for ~2x MXU throughput if accuracy allows.
    y_ref[...] = jnp.dot(xc, w_ref[...],
                         preferred_element_type=jnp.float32)


@functools.partial(jax.jit, static_argnames=("num_groups",))
def group_whitening_1d(x, num_groups):
    """JAX/Pallas equivalent of GroupWhitening1d.forward (shuffle=False)."""
    N, D = x.shape
    G = num_groups
    assert D % G == 0
    d = D // G
    x = x.astype(jnp.float32)

    # --- N tiling (zero-padding is exact for sum / X^T X accumulation) -------
    tile_n = min(512, N)
    tile_n = max(8, ((tile_n + 7) // 8) * 8)              # sublane multiple
    n_pad = ((N + tile_n - 1) // tile_n) * tile_n
    x_p = jnp.pad(x, ((0, n_pad - N), (0, 0))) if n_pad != N else x
    num_tiles = n_pad // tile_n

    vmem_params = dict(vmem_limit_bytes=48 * 1024 * 1024)

    # --- Kernel 1: one streaming pass -> column sums + second moment ---------
    sum_x, xtx = pl.pallas_call(
        _moments_kernel,
        out_shape=(
            jax.ShapeDtypeStruct((1, D), jnp.float32),
            jax.ShapeDtypeStruct((D, D), jnp.float32),
        ),
        grid_spec=pltpu.PrefetchScalarGridSpec(
            num_scalar_prefetch=0,
            grid=(num_tiles,),
            in_specs=[pl.BlockSpec((tile_n, D), lambda i: (i, 0))],
            out_specs=(
                pl.BlockSpec((1, D), lambda i: (0, 0)),
                pl.BlockSpec((D, D), lambda i: (0, 0)),
            ),
        ),
        compiler_params=pltpu.CompilerParams(
            dimension_semantics=("arbitrary",), **vmem_params),
    )(x_p)

    # --- Tiny per-group algebra in plain JAX (next to the eigh sync point) ---
    mean = sum_x / N                                       # (1, D)
    mean_g = mean.reshape(G, d)                            # (G, d)
    m4 = xtx.reshape(G, d, G, d)
    m_gg = m4[jnp.arange(G), :, jnp.arange(G), :]          # (G, d, d) diag blocks
    covs = (m_gg - N * mean_g[:, :, None] * mean_g[:, None, :]) / (N - 1)

    # eigh in plain JAX (mirrors torch.linalg.eigh which torch runs on CPU).
    S, U = jnp.linalg.eigh(covs)                           # (G, d), (G, d, d)
    S = jnp.maximum(S, 1e-7)                               # guard rsqrt vs ~0/neg
    inv_sqrt = jax.lax.rsqrt(S)
    W = jnp.einsum("gik,gk,gjk->gij", U, inv_sqrt, U)      # (G, d, d)

    # Block-diagonal (D, D) whitening matrix.
    eye_g = jnp.eye(G, dtype=jnp.float32)
    w_bd = (W[:, :, None, :] * eye_g[:, None, :, None]).reshape(D, D)

    # --- Kernel 2: re-center from x and apply W in one matmul per tile -------
    y_p = pl.pallas_call(
        _whiten_kernel,
        out_shape=jax.ShapeDtypeStruct((n_pad, D), jnp.float32),
        grid_spec=pltpu.PrefetchScalarGridSpec(
            num_scalar_prefetch=0,
            grid=(num_tiles,),
            in_specs=[
                pl.BlockSpec((tile_n, D), lambda i: (i, 0)),
                pl.BlockSpec((1, D), lambda i: (0, 0)),
                pl.BlockSpec((D, D), lambda i: (0, 0)),
            ],
            out_specs=pl.BlockSpec((tile_n, D), lambda i: (i, 0)),
        ),
        compiler_params=pltpu.CompilerParams(
            dimension_semantics=("parallel",), **vmem_params),
    )(x_p, mean, w_bd)

    return y_p[:N]                                         # (N, D)


def _reference(x, num_groups):
    """Pure-JAX reference mirroring the PyTorch forward (shuffle=False)."""
    N, D = x.shape
    G = num_groups
    d = D // G
    xg = x.reshape(N, G, d)
    xg = xg - xg.mean(axis=0, keepdims=True)
    xg = xg.transpose(1, 0, 2)                             # (G, N, d)
    covs = jnp.einsum("gnd,gne->gde", xg, xg) / (N - 1)
    S, U = jnp.linalg.eigh(covs)
    W = jnp.einsum("gik,gk,gjk->gij", U, 1.0 / jnp.sqrt(S), U)
    y = jnp.einsum("gnd,gde->gne", xg, W)
    return y.transpose(1, 0, 2).reshape(N, D)


if __name__ == "__main__":
    # Small shapes consistent with the module: num_features=32, num_groups=4,
    # batch N=16 (N > d so per-group covariances are full rank).
    N, D, G = 16, 32, 4
    key = jax.random.PRNGKey(0)
    x = jax.random.normal(key, (N, D), dtype=jnp.float32)

    out = group_whitening_1d(x, num_groups=G)
    out = jax.block_until_ready(out)

    ref = _reference(x, G)
    assert out.shape == (N, D)
    assert jnp.allclose(out, ref, atol=1e-3, rtol=1e-3), "mismatch vs reference"

    print("KERNEL_OK")
</pallas_src>

<mosaic_0001>
module attributes {stable_mosaic.version = 11 : i64} {
  func.func @_moments_kernel(%arg0: i32, %arg1: memref<16x32xf32, #tpu.memory_space<vmem>>, %arg2: memref<1x32xf32, #tpu.memory_space<vmem>>, %arg3: memref<32x32xf32, #tpu.memory_space<vmem>>) attributes {dimension_semantics = [#tpu.dimension_semantics<arbitrary>], iteration_bounds = array<i64: 1>, scalar_prefetch = 0 : i64, scratch_operands = 0 : i64, tpu.core_type = #tpu.core_type<tc>, window_params = [{transform_indices = @transform_0, window_bounds = array<i64: 16, 32>}, {pipeline_mode = #tpu.pipeline_mode<synchronous>, transform_indices = @transform_1, window_bounds = array<i64: 1, 32>}, {pipeline_mode = #tpu.pipeline_mode<synchronous>, transform_indices = @transform_2, window_bounds = array<i64: 32, 32>}]} {
    %c0_i32 = arith.constant 0 : i32
    %0 = arith.cmpi eq, %arg0, %c0_i32 : i32
    %1 = arith.extui %0 : i1 to i32
    %c0_i32_0 = arith.constant 0 : i32
    %2 = arith.cmpi ne, %1, %c0_i32_0 : i32
    scf.if %2 {
      %cst_11 = arith.constant 0.000000e+00 : f32
      %13 = vector.broadcast %cst_11 : f32 to vector<1x32xf32>
      %c0_12 = arith.constant 0 : index
      %c0_13 = arith.constant 0 : index
      %14 = vector.load %arg2[%c0_12, %c0_13] : memref<1x32xf32, #tpu.memory_space<vmem>>, vector<1x32xf32>
      tpu.vector_store %arg2[%c0_12, %c0_13], %13 {strides = array<i32>} : memref<1x32xf32, #tpu.memory_space<vmem>>, vector<1x32xf32>,
      %cst_14 = arith.constant 0.000000e+00 : f32
      %15 = vector.broadcast %cst_14 : f32 to vector<32x32xf32>
      %c0_15 = arith.constant 0 : index
      %c0_16 = arith.constant 0 : index
      %16 = vector.load %arg3[%c0_15, %c0_16] : memref<32x32xf32, #tpu.memory_space<vmem>>, vector<32x32xf32>
      tpu.vector_store %arg3[%c0_15, %c0_16], %15 {strides = array<i32>} : memref<32x32xf32, #tpu.memory_space<vmem>>, vector<32x32xf32>,
    } else {
    }
    %c0 = arith.constant 0 : index
    %c0_1 = arith.constant 0 : index
    %3 = vector.load %arg1[%c0, %c0_1] : memref<16x32xf32, #tpu.memory_space<vmem>>, vector<16x32xf32>
    %c0_2 = arith.constant 0 : index
    %c0_3 = arith.constant 0 : index
    %4 = vector.load %arg2[%c0_2, %c0_3] : memref<1x32xf32, #tpu.memory_space<vmem>>, vector<1x32xf32>
    %cst = arith.constant dense<0.000000e+00> : vector<32xf32>
    %5 = vector.multi_reduction <add>, %3, %cst [0] : vector<16x32xf32> to vector<32xf32>
    %6 = vector.shape_cast %5 : vector<32xf32> to vector<1x32xf32>
    %7 = arith.addf %4, %6 : vector<1x32xf32>
    %c0_4 = arith.constant 0 : index
    %c0_5 = arith.constant 0 : index
    %8 = vector.load %arg2[%c0_4, %c0_5] : memref<1x32xf32, #tpu.memory_space<vmem>>, vector<1x32xf32>
    tpu.vector_store %arg2[%c0_4, %c0_5], %7 {strides = array<i32>} : memref<1x32xf32, #tpu.memory_space<vmem>>, vector<1x32xf32>,
    %c0_6 = arith.constant 0 : index
    %c0_7 = arith.constant 0 : index
    %9 = vector.load %arg3[%c0_6, %c0_7] : memref<32x32xf32, #tpu.memory_space<vmem>>, vector<32x32xf32>
    "tpu.trace_start"() <{level = 10 : i32, message = "nd,ne->de"}> : () -> ()
    %cst_8 = arith.constant dense<0.000000e+00> : vector<32x32xf32>
    %10 = tpu.matmul %3, %3, %cst_8 {dimension_numbers = #tpu.dot_dimension_numbers<[0], [0], [1], [1], [0, 1, 1, 1], [], []>} : vector<16x32xf32>, vector<16x32xf32>, vector<32x32xf32> -> vector<32x32xf32>
    "tpu.trace_stop"() : () -> ()
    %11 = arith.addf %9, %10 : vector<32x32xf32>
    %c0_9 = arith.constant 0 : index
    %c0_10 = arith.constant 0 : index
    %12 = vector.load %arg3[%c0_9, %c0_10] : memref<32x32xf32, #tpu.memory_space<vmem>>, vector<32x32xf32>
    tpu.vector_store %arg3[%c0_9, %c0_10], %11 {strides = array<i32>} : memref<32x32xf32, #tpu.memory_space<vmem>>, vector<32x32xf32>,
    return
  }
  func.func @transform_0(%arg0: i32) -> (i32, i32) {
    %c0_i32 = arith.constant 0 : i32
    %c0_i32_0 = arith.constant 0 : i32
    return %arg0, %c0_i32 : i32, i32
  }
  func.func @transform_1(%arg0: i32) -> (i32, i32) {
    %c0_i32 = arith.constant 0 : i32
    %c0_i32_0 = arith.constant 0 : i32
    %c0_i32_1 = arith.constant 0 : i32
    return %c0_i32, %c0_i32_0 : i32, i32
  }
  func.func @transform_2(%arg0: i32) -> (i32, i32) {
    %c0_i32 = arith.constant 0 : i32
    %c0_i32_0 = arith.constant 0 : i32
    %c0_i32_1 = arith.constant 0 : i32
    return %c0_i32, %c0_i32_0 : i32, i32
  }
}

module attributes {stable_mosaic.version = 11 : i64} {
  func.func @_whiten_kernel(%arg0: i32, %arg1: memref<16x32xf32, #tpu.memory_space<vmem>>, %arg2: memref<1x32xf32, #tpu.memory_space<vmem>>, %arg3: memref<32x32xf32, #tpu.memory_space<vmem>>, %arg4: memref<16x32xf32, #tpu.memory_space<vmem>>) attributes {dimension_semantics = [#tpu.dimension_semantics<parallel>], iteration_bounds = array<i64: 1>, scalar_prefetch = 0 : i64, scratch_operands = 0 : i64, tpu.core_type = #tpu.core_type<tc>, window_params = [{transform_indices = @transform_0, window_bounds = array<i64: 16, 32>}, {pipeline_mode = #tpu.pipeline_mode<synchronous>, transform_indices = @transform_1, window_bounds = array<i64: 1, 32>}, {pipeline_mode = #tpu.pipeline_mode<synchronous>, transform_indices = @transform_2, window_bounds = array<i64: 32, 32>}, {transform_indices = @transform_3, window_bounds = array<i64: 16, 32>}]} {
    %c0 = arith.constant 0 : index
    %c0_0 = arith.constant 0 : index
    %0 = vector.load %arg1[%c0, %c0_0] : memref<16x32xf32, #tpu.memory_space<vmem>>, vector<16x32xf32>
    %c0_1 = arith.constant 0 : index
    %c0_2 = arith.constant 0 : index
    %1 = vector.load %arg2[%c0_1, %c0_2] : memref<1x32xf32, #tpu.memory_space<vmem>>, vector<1x32xf32>
    %2 = vector.broadcast %1 : vector<1x32xf32> to vector<16x32xf32>
    %3 = arith.subf %0, %2 : vector<16x32xf32>
    %c0_3 = arith.constant 0 : index
    %c0_4 = arith.constant 0 : index
    %4 = vector.load %arg3[%c0_3, %c0_4] : memref<32x32xf32, #tpu.memory_space<vmem>>, vector<32x32xf32>
    %cst = arith.constant dense<0.000000e+00> : vector<16x32xf32>
    %5 = tpu.matmul %3, %4, %cst {dimension_numbers = #tpu.dot_dimension_numbers<[1], [0], [0], [1], [0, 0, 1, 1], [], []>} : vector<16x32xf32>, vector<32x32xf32>, vector<16x32xf32> -> vector<16x32xf32>
    %c0_5 = arith.constant 0 : index
    %c0_6 = arith.constant 0 : index
    %6 = vector.load %arg4[%c0_5, %c0_6] : memref<16x32xf32, #tpu.memory_space<vmem>>, vector<16x32xf32>
    tpu.vector_store %arg4[%c0_5, %c0_6], %5 {strides = array<i32>} : memref<16x32xf32, #tpu.memory_space<vmem>>, vector<16x32xf32>,
    return
  }
  func.func @transform_0(%arg0: i32) -> (i32, i32) {
    %c0_i32 = arith.constant 0 : i32
    %c0_i32_0 = arith.constant 0 : i32
    return %arg0, %c0_i32 : i32, i32
  }
  func.func @transform_1(%arg0: i32) -> (i32, i32) {
    %c0_i32 = arith.constant 0 : i32
    %c0_i32_0 = arith.constant 0 : i32
    %c0_i32_1 = arith.constant 0 : i32
    return %c0_i32, %c0_i32_0 : i32, i32
  }
  func.func @transform_2(%arg0: i32) -> (i32, i32) {
    %c0_i32 = arith.constant 0 : i32
    %c0_i32_0 = arith.constant 0 : i32
    %c0_i32_1 = arith.constant 0 : i32
    return %c0_i32, %c0_i32_0 : i32, i32
  }
  func.func @transform_3(%arg0: i32) -> (i32, i32) {
    %c0_i32 = arith.constant 0 : i32
    %c0_i32_0 = arith.constant 0 : i32
    return %arg0, %c0_i32 : i32, i32
  }
}

</mosaic_0001>

<bundles_post_ra>
// kernel: custom-call.2
= control target key start
LH: loop header
LB: loop body
LE: loop exit
PB: predicated region body
PF: predicated region fallthrough
CT: control target
= control target key end

     0   :  { %s1704_s30 = smov 0   ;;  %s1706_s10 = smov 0   ;;  %s2031_s0 = inlined_call_operand.vmem [shape: f32[4,4,4], index: 0, kind: input, shape index: {}]   ;;  %s2032_s1 = inlined_call_operand.vmem [shape: f32[4,4,4], index: 1, kind: input, shape index: {}]   ;;  %s2033_s2 = inlined_call_operand.vmem [shape: f32[4,4,4], index: 2, kind: input, shape index: {}]   ;;  %s2034_s3 = inlined_call_operand.vmem [shape: f32[4,4,4], index: 3, kind: input, shape index: {}]   ;;  %s2035_s4 = inlined_call_operand.vmem [shape: f32[4,4], index: 4, kind: output, shape index: {0}]   ;;  %s2036_s5 = inlined_call_operand.vmem [shape: f32[4,4], index: 5, kind: output, shape index: {1}]   ;;  %s2037_s6 = inlined_call_operand.vmem [shape: f32[4,4,4], index: 6, kind: output, shape index: {2}]   ;;  %s2038_s7 = inlined_call_operand.vmem [shape: f32[4,4,4], index: 7, kind: output, shape index: {3}]   ;;  %s2039_s8 = inlined_call_operand.vmem [shape: f32[4,4,4], index: 8, kind: output, shape index: {4}]   ;;  %s2040_s9 = inlined_call_operand.vmem [shape: f32[4,4,4], index: 9, kind: output, shape index: {5}]  }
   0x1   :  { %s1708_s11 = smov 0  }
   0x2 LB: > { %s1720_s12 = sadd.s32 4294967295, %s1641_s11   ;;  %s1723_s13 = sadd.s32 1, %s1641_s11   ;;  %s1641_s11 = sphi %s1708_s11, %s2059_s11   ;;  %s1637_s10 = sphi %s1706_s10, %s2058_s10   ;;  %s1633_s30 = sphi %s1704_s30, %s2057_s30  }
   0x3   : > { %s20_s14 = sshrl.u32 %s1641_s11, 3  ;;  %s21_s15 = sshrl.u32 %s1723_s13, 3 }
   0x4   : > { %s22_s16 = ssub.s32 %s20_s14, %s21_s15  ;;  %s25_s17 = sadd.s32 1, %s1637_s10 }
   0x5   : > { %p23_p0 = scmp.eq.s32.totalorder %s22_s16, 0  ;;  %p35_p1 = scmp.ne.s32.totalorder %s1637_s10, %s1633_s30 }
   0x6   : > { %p36_p2 = scmp.eq.s32.totalorder %s1720_s12, 3  ;;  %p1502_p4 = scmp.ge.s32.totalorder %s1641_s11, 4 }
   0x7   : > { %s1732_s18 = scalar_select %p23_p0, %s1637_s10, %s25_s17  }
   0x8   : > { %p1734_p3 = por %p36_p2, %p35_p1  ;;  %86 = sbr.rel (%p1502_p4) target bundleno = 17 (0x11), region = 16 }
   0x9   : > { %2041 = sst [smem:[#allocation33_spill]] %s1732_s18  ;;  %s88_s20 = sand.u32 (!%p1502_p4), 1, %s1641_s11  }
   0xa   : > { %s1504_s21 = sshll.u32 (!%p1502_p4), %s1641_s11, 2  ;;  %s1503_s22 = sshll.u32 (!%p1502_p4), %s88_s20, 2 }
   0xb   : > { %s92_s25 = scalar_lea.vmem (!%p1502_p4), %s2031_s0, %s1504_s21  ;;  %s90_s26 = scalar_lea.vmem (!%p1502_p4), [#allocation1], %s1503_s22 }
   0xc   : > { %v108_v0 = vld [vmem:[%s92_s25] sm:$0xf] (!%p1502_p4)  ;;  %s129_s29 = scalar_lea.vmem (!%p1502_p4), %s2032_s1, %s1504_s21  ;;  %s166_s16 = scalar_lea.vmem (!%p1502_p4), %s2033_s2, %s1504_s21 }
   0xd   : > { %109 = vst [vmem:[%s90_s26] sm:$0xf] (!%p1502_p4), %v108_v0  ;;  %v145_v1 = vld [vmem:[%s129_s29] sm:$0xf] (!%p1502_p4)  ;;  %s127_s17 = scalar_lea.vmem (!%p1502_p4), [#allocation3], %s1503_s22  ;;  %s203_s23 = scalar_lea.vmem (!%p1502_p4), %s2034_s3, %s1504_s21 }
   0xe   : > { %146 = vst [vmem:[%s127_s17] sm:$0xf] (!%p1502_p4), %v145_v1  ;;  %v182_v2 = vld [vmem:[%s166_s16] sm:$0xf] (!%p1502_p4)  ;;  %s164_s24 = scalar_lea.vmem (!%p1502_p4), [#allocation5], %s1503_s22  ;;  %s201_s25 = scalar_lea.vmem (!%p1502_p4), [#allocation7], %s1503_s22 }
   0xf   : > { %183 = vst [vmem:[%s164_s24] sm:$0xf] %v182_v2  ;;  %v219_v3 = vld [vmem:[%s203_s23] sm:$0xf] }
  0x10   : > { %220 = vst [vmem:[%s201_s25] sm:$0xf] %v219_v3 }
  0x11 PF: > { %p1511_p5 = scmp.ge.s32.totalorder %s1641_s11, 1  ;;  %p236_p6 = scmp.lt.s32.totalorder %s1641_s11, 5 }
  0x13   : > { %p237_p7 = pnand %p1511_p5, %p236_p6 }
  0x15   : > { %240 = sbr.rel (%p237_p7) target bundleno = 999 (0x3e7), region = 140 }
  0x1c   : > { %s259_s26 = sand.u32 1, %s1720_s12   ;;  %s277_s27 = sand.u32 1, %s1633_s30   ;;  %v337_v4 = vlaneseq  ;;  %v1651_v5 = vmov 0.0  }
  0x1d   : > { %s1757_s28 = sshll.u32 %s259_s26, 2  ;;  %s1759_s18 = sshll.u32 %s277_s27, 2  ;;  %332 = vst [vmem:[#allocation12] sm:$0xff] %v1651_v5  ;;  %333 = vst [vmem:[#allocation14] sm:$0xff] %v1651_v5 }
  0x1e   : > { %334 = vst [vmem:[#allocation16] sm:$0xff] %v1651_v5  ;;  %335 = vst [vmem:[#allocation18] sm:$0xff] %v1651_v5  ;;  %v1761_v6 = vand.u32 127, %v337_v4  ;;  %v1763_v7 = vshrl.u32 %v337_v4, 7  ;;  %s261_s11 = scalar_lea.vmem [#allocation1], %s1757_s28  ;;  %s265_s30 = scalar_lea.vmem [#allocation3], %s1757_s28 }
  0x1f   : > { %v304_v8 = vld [vmem:[%s261_s11] sm:$0xf]  ;;  %v308_v9 = vld [vmem:[%s265_s30] sm:$0xf]  ;;  %s269_s21 = scalar_lea.vmem [#allocation5], %s1757_s28  ;;  %s273_s22 = scalar_lea.vmem [#allocation7], %s1757_s28 }
  0x20   : > { %305 = vst [vmem:[#allocation0] sm:$0xf] %v304_v8  ;;  %309 = vst [vmem:[#allocation2] sm:$0xf] %v308_v9  ;;  %v312_v10 = vld [vmem:[%s269_s21] sm:$0xf]  ;;  %v339_v6 = vmov %v1761_v6  ;;  %v342_v7 = vmov %v1763_v7 }
  0x21   : > { %v316_v11 = vld [vmem:[%s273_s22] sm:$0xf]  ;;  %313 = vst [vmem:[#allocation4] sm:$0xf] %v312_v10  ;;  %v352_v6 = vmov %v1761_v6  ;;  %v355_v7 = vmov %v1763_v7  ;;  %s320_s29 = smov [#allocation20]  ;;  %s323_s14 = smov [#allocation21]  ;;  %vm346_vm0 = vcmp.eq.s32.totalorder %v342_v7, %v339_v6 }
  0x22   : > { %317 = vst [vmem:[#allocation6] sm:$0xf] %v316_v11  ;;  %vm359_vm1 = vcmp.eq.s32.totalorder %v355_v7, %v352_v6  ;;  %s336_s15 = smov [#allocation12]  ;;  %s349_s16 = smov [#allocation18]  ;;  %vm1391_vm2 = vcmp.lt.s32.totalorder %v1761_v6, 4  ;;  %v1383_v6 = vmov %v1761_v6  ;;  %v1386_v7 = vmov %v1763_v7 }
  0x23   : > { %s326_s17 = smov [#allocation22]  ;;  %s329_s20 = smov [#allocation23]  ;;  %vm1396_vm3 = vcmp.eq.s32.totalorder %v1386_v7, %v1383_v6  ;;  %v1434_v6 = vmov %v1761_v6  ;;  %v1403_v7 = vmov %v1763_v7 }
  0x24   : > { %v343_v12 = vld [vmem:[%s336_s15] sm:$0xf]  ;;  %s1387_s30 = smov [#allocation20]  ;;  %s1404_s21 = smov [#allocation21]  ;;  %v1400_v6 = vmov %v1761_v6  ;;  %v1437_v7 = vmov %v1763_v7 }
  0x25   : > { %v356_v13 = vld [vmem:[%s349_s16] sm:$0xf]  ;;  %v347_v16 = vsel %vm346_vm0, 1.0, %v343_v12  ;;  %s1421_s22 = smov [#allocation22]  ;;  %v1417_v6 = vmov %v1761_v6  ;;  %v1420_v7 = vmov %v1763_v7  ;;  %vm1447_vm4 = vcmp.eq.s32.totalorder %v1437_v7, %v1434_v6 }
  0x26   : > { %v360_v17 = vsel %vm359_vm1, 1.0, %v356_v13  ;;  %348 = vst [vmem:[%s336_s15] sm:$0xf] %v347_v16 }
  0x27   : > { %v321_v14 = vld [vmem:[#allocation0] sm:$0xff]  ;;  %v324_v15 = vld [vmem:[#allocation2] sm:$0xff]  ;;  %361 = vst [vmem:[%s349_s16] sm:$0xf] %v360_v17 }
  0x28   : > { %322 = vst [vmem:[%s320_s29] sm:$0xff] %v321_v14  ;;  %325 = vst [vmem:[%s323_s14] sm:$0xff] %v324_v15  ;;  %v327_v18 = vld [vmem:[#allocation4] sm:$0xff]  ;;  %s1438_s29 = smov [#allocation23] }
  0x29   : > { %v330_v19 = vld [vmem:[#allocation6] sm:$0xff]  ;;  %328 = vst [vmem:[%s326_s17] sm:$0xff] %v327_v18 }
  0x2a   : > { %331 = vst [vmem:[%s329_s20] sm:$0xff] %v330_v19 }
  0x2f   : > { %v1393_v20 = vld [vmem:[%s1387_s30] sm:$0xf] }
  0x30   : > { %v1410_v21 = vld [vmem:[%s1404_s21] sm:$0xf]  ;;  %v1394_v22 = vsel %vm1391_vm2, %v1393_v20, 0.0 }
  0x31   : > { %v1411_v23 = vsel %vm1391_vm2, %v1410_v21, 0.0  ;;  %v1427_v24 = vld [vmem:[%s1421_s22] sm:$0xf]  ;;  %v1395_v26 = vmul.f32 %v1394_v22, %v1394_v22 }
  0x32   : > { %v1444_v25 = vld [vmem:[%s1438_s29] sm:$0xf]  ;;  %v1412_v27 = vmul.f32 %v1411_v23, %v1411_v23  ;;  %v1428_v28 = vsel %vm1391_vm2, %v1427_v24, 0.0 }
  0x33   : > { %v1445_v29 = vsel %vm1391_vm2, %v1444_v25, 0.0  ;;  %v1429_v30 = vmul.f32 %v1428_v28, %v1428_v28  ;;  %v1397_v33 = vsel %vm1396_vm3, 0.0, %v1395_v26 }
  0x34   : > { %v1414_v31 = vadd.f32 %v1412_v27, %v1395_v26  ;;  %v1446_v32 = vmul.f32 %v1445_v29, %v1445_v29  ;;  %v1413_v34 = vadd.f32 %v1412_v27, %v1397_v33 }
  0x36   : > { %v1431_v35 = vadd.f32 %v1429_v30, %v1414_v31  ;;  %v1430_v36 = vadd.f32 %v1429_v30, %v1413_v34  ;;  %v1448_v37 = vsel %vm1447_vm4, 0.0, %v1446_v32 }
  0x38   : > { %v1450_v38 = vadd.f32 %v1446_v32, %v1431_v35  ;;  %v1449_v39 = vadd.f32 %v1448_v37, %v1430_v36 }
  0x3a   : > { %1451 = vadd.xlane.f32.xlu0 %v1450_v38 }
  0x3e   : > { %1459 = vadd.xlane.f32.xlu0 %v1449_v39 }
  0xc7   : > { %v1452_v40 = vpop.xlane.xlu0 %1451 }
  0xc8   : > { %v1453_v41 = vrot.slane %v1452_v40, 4 }
  0xca   : > { %v1454_v42 = vadd.f32 %v1453_v41, %v1452_v40 }
  0xcb   : > { %v1460_v43 = vpop.xlane.xlu0 %1459 }
  0xcc   : > { %v1455_v44 = vrot.slane %v1454_v42, 2  ;;  %v1461_v45 = vrot.slane %v1460_v43, 4 }
  0xce   : > { %v1462_v46 = vadd.f32 %v1461_v45, %v1460_v43  ;;  %v1456_v47 = vadd.f32 %v1455_v44, %v1454_v42 }
  0xd0   : > { %v1463_v48 = vrot.slane %v1462_v46, 2  ;;  %v1457_v50 = vrot.slane %v1456_v47, 1 }
  0xd2   : > { %v1464_v49 = vadd.f32 %v1463_v48, %v1462_v46  ;;  %v1458_v53 = vadd.f32 %v1457_v50, %v1456_v47 }
  0xd4   : > { %v1465_v51 = vrot.slane %v1464_v49, 1 }
  0xd6   : > { %v1466_v52 = vadd.f32 %v1465_v51, %v1464_v49 }
  0xd8   : > { %1552 = vpush %v1466_v52 }
  0xd9   : > { %1554 = vpush %v1458_v53 }
 0x109   : > { %s1553_s14 = spop %1552 }
 0x10a   : > { %s1555_s15 = spop %1554 }
 0x10b   : > { %s1469_s16 = smul.f32 1e-10, %s1555_s15 }
 0x10d   : > { %p1470_p8 = scmp.le.f32.partialorder %s1553_s14, %s1469_s16 }
 0x10e   : > { %s1797_s17 = smov (!%p1470_p8), 0  }
 0x10f   : > { %1473 = sbr.rel (%p1470_p8) target bundleno = 953 (0x3b9), region = 467 }
 0x116 LB: >> { %s1802_s20 = smov 0   ;;  %s1645_s17 = sphi %s1797_s17, %s2043_s17  }
 0x117 LB: >>> { %s466_s30 = smov [#allocation20]  ;;  %v470_v6 = vmov %v1761_v6  ;;  %v473_v7 = vmov %v1763_v7  ;;  %s486_s21 = smov [#allocation21]  ;;  %vm789_vm14 = vcmp.eq.s32.totalorder %v1763_v7, 0  ;;  %vm801_vm15 = vcmp.eq.s32.totalorder %v1763_v7, 3  ;;  %s1649_s20 = sphi %s1802_s20, %s465_s20  }
 0x118   : >>> { %v490_v6 = vmov %v1761_v6  ;;  %v493_v7 = vmov %v1763_v7  ;;  %v474_v54 = vld [vmem:[%s466_s30] sm:$0xf]  ;;  %vm477_vm5 = vcmp.eq.s32.totalorder %v473_v7, %v470_v6  ;;  %s506_s22 = smov [#allocation23]  ;;  %s467_s29 = smov [#allocation24] }
 0x119   : >>> { %vm497_vm6 = vcmp.eq.s32.totalorder %v493_v7, %v490_v6  ;;  %v510_v6 = vmov %v1761_v6  ;;  %v513_v7 = vmov %v1763_v7  ;;  %v478_v55 = vsel %vm477_vm5, %v474_v54, 0.0  ;;  %v494_v56 = vld [vmem:[%s486_s21] sm:$0xf]  ;;  %s487_s14 = smov [#allocation25]  ;;  %s507_s15 = smov [#allocation26] }
 0x11a   : >>> { %vm517_vm7 = vcmp.eq.s32.totalorder %v513_v7, %v510_v6  ;;  %v479_v57 = vrot.slane %v478_v55, 4  ;;  %v498_v58 = vsel %vm497_vm6, %v494_v56, 0.0  ;;  %v514_v59 = vld [vmem:[%s506_s22] sm:$0xf]  ;;  %s530_s16 = smov [#allocation25]  ;;  %s528_s30 = smov [#allocation24]  ;;  %v579_v6 = vmov %v1761_v6 }
 0x11b   : >>> { %v499_v60 = vrot.slane %v498_v58, 4  ;;  %v518_v61 = vsel %vm517_vm7, %v514_v59, 0.0  ;;  %s532_s21 = smov [#allocation26]  ;;  %s567_s22 = smov [#allocation27]  ;;  %v582_v7 = vmov %v1763_v7  ;;  %v594_v6 = vmov %v1761_v6 }
 0x11c   : >>> { %v480_v62 = vadd.f32 %v479_v57, %v478_v55  ;;  %v519_v63 = vrot.slane %v518_v61, 4  ;;  %v597_v7 = vmov %v1763_v7  ;;  %vm584_vm12 = vcmp.eq.s32.totalorder %v582_v7, %v579_v6  ;;  %s1821_s24 = smov [#allocation22]  ;;  %s1827_s23 = smov [#allocation14] }
 0x11d   : >>> { %v500_v0 = vadd.f32 %v499_v60, %v498_v58  ;;  %vm599_vm13 = vcmp.eq.s32.totalorder %v597_v7, %v594_v6  ;;  %s829_s11 = smov [#allocation31]  ;;  %s1833_s27 = smov [#allocation18]  ;;  %v615_v55 = vld [vmem:[%s1821_s24] sm:$0xf]  ;;  %v692_v6 = vmov %v1761_v6  ;;  %v695_v7 = vmov %v1763_v7 }
 0x11e   : >>> { %v481_v1 = vrot.slane %v480_v62, 2  ;;  %v520_v2 = vadd.f32 %v519_v63, %v518_v61  ;;  %v838_v58 = vld [vmem:[%s1827_s23] sm:$0xf]  ;;  %s607_s26 = smov [#allocation32]  ;;  %s831_s25 = smov [#allocation32]  ;;  %v706_v6 = vmov %v1761_v6  ;;  %v709_v7 = vmov %v1763_v7 }
 0x11f   : >>> { %v501_v3 = vrot.slane %v500_v0, 2  ;;  %v840_v61 = vld [vmem:[%s1833_s27] sm:$0xf]  ;;  %vm699_vm0 = vcmp.eq.s32.totalorder %v695_v7, %v692_v6  ;;  %v665_v6 = vmov %v1761_v6  ;;  %v668_v7 = vmov %v1763_v7  ;;  %s465_s20 = sadd.s32 1, %s1649_s20  }
 0x120   : >>> { %v482_v4 = vadd.f32 %v481_v1, %v480_v62  ;;  %v521_v5 = vrot.slane %v520_v2, 2  ;;  %v679_v6 = vmov %v1761_v6  ;;  %v682_v7 = vmov %v1763_v7  ;;  %p462_p9 = scmp.ge.s32.totalorder %s465_s20, 7  }
 0x121   : >>> { %v502_v8 = vadd.f32 %v501_v3, %v500_v0  ;;  %vm714_vm1 = vcmp.eq.s32.totalorder %v709_v7, %v706_v6  ;;  %vm673_vm3 = vcmp.eq.s32.totalorder %v668_v7, %v665_v6  ;;  %vm686_vm4 = vcmp.eq.s32.totalorder %v682_v7, %v679_v6 }
 0x122   : >>> { %v483_v9 = vrot.slane %v482_v4, 1  ;;  %v522_v10 = vadd.f32 %v521_v5, %v520_v2  ;;  %vm728_vm5 = vcmp.eq.s32.totalorder %v1761_v6, 0  ;;  %vm732_vm6 = vcmp.eq.s32.totalorder %v1761_v6, 1 }
 0x123   : >>> { %v503_v11 = vrot.slane %v502_v8, 1  ;;  %vm745_vm7 = vcmp.eq.s32.totalorder %v1761_v6, 3  ;;  %v366_v6 = vmov (%p462_p9), %v1761_v6  ;;  %v369_v7 = vmov (%p462_p9), %v1763_v7 }
 0x124   : >>> { %v484_v12 = vadd.f32 %v483_v9, %v482_v4  ;;  %v523_v13 = vrot.slane %v522_v10, 1  ;;  %v419_v6 = vmov (%p462_p9), %v1761_v6 }
 0x125   : >>> { %v504_v14 = vadd.f32 %v503_v11, %v502_v8 }
 0x126   : >>> { %485 = vst [vmem:[%s467_s29] sm:$0x1] %v484_v12  ;;  %v524_v15 = vadd.f32 %v523_v13, %v522_v10  ;;  %s569_s29 = smov [#allocation28] }
 0x127   : >>> { %505 = vst [vmem:[%s487_s14] sm:$0x1] %v504_v14  ;;  %s526_s14 = smov [#allocation29] }
 0x128   : >>> { %525 = vst [vmem:[%s507_s15] sm:$0x1] %v524_v15  ;;  %s527_s15 = smov [#allocation30]  ;;  %s571_s14 = smov %s526_s14 }
 0x129   : >>> { %s573_s15 = smov %s527_s15 }
 0x12d   : >>> { %v529_v18 = vld [vmem:[%s528_s30] sm:$0xff]  ;;  %s590_s30 = smov [#allocation30] }
 0x12e   : >>> { %v531_v16 = vld [vmem:[%s530_s16] sm:$0xff]  ;;  %v552_v31 = vand.u32 2147483647, %v529_v18  ;;  %s575_s16 = smov [#allocation29] }
 0x12f   : >>> { %v535_v17 = vmul.f32 2.0, %v531_v16  ;;  %v533_v19 = vld [vmem:[%s532_s21] sm:$0xff]  ;;  %v553_v36 = vand.u32 2147483647, %v531_v16  ;;  %s588_s21 = smov [#allocation31] }
 0x130   : >>> { %v534_v20 = vsub.f32 %v533_v19, %v529_v18  ;;  %v554_v32 = vand.u32 2147483647, %v533_v19 }
 0x131   : >>> { %1603 = vrcp.f32 %v535_v17 }
 0x132   : >>> { %v555_v35 = vmin.f32 %v552_v31, %v554_v32 }
 0x134   : >>> { %v556_v37 = vmul.f32 1.1920929e-08, %v555_v35 }
 0x136   : >>> { %vm557_vm11 = vcmp.le.f32.partialorder %v553_v36, %v556_v37 }
 0x13b   : >>> { %v1604_v21 = vpop.eup %1603 }
 0x13c   : >>> { %v537_v22 = vmul.f32 %v1604_v21, %v534_v20 }
 0x13e   : >>> { %v539_v23 = vmul.f32 %v537_v22, %v537_v22  ;;  %vm538_vm10 = vcmp.ge.f32.partialorder %v537_v22, 0.0 }
 0x140   : >>> { %v540_v24 = vadd.f32 1.0, %v539_v23 }
 0x142   : >>> { %1605 = vrsqrt.f32 %v540_v24  ;;  %vm543_vm8 = vcmp.eq.f32.partialorder %v540_v24, inf  ;;  %v546_v26 = vand.u32 2147483648, %v540_v24  ;;  %vm545_vm9 = vcmp.eq.f32.partialorder %v540_v24, 0.0 }
 0x14c   : >>> { %v1606_v25 = vpop.eup %1605 }
 0x14d   : >>> { %v542_v27 = vmul.f32 %v1606_v25, %v540_v24 }
 0x14f   : >>> { %v544_v28 = vsel %vm543_vm8, %v540_v24, %v542_v27  ;;  %vm381_vm8 = vcmp.eq.s32.totalorder (%p462_p9), %v369_v7, %v366_v6  ;;  %v422_v7 = vmov (%p462_p9), %v1763_v7  ;;  %v385_v6 = vmov (%p462_p9), %v1761_v6 }
 0x150   : >>> { %v547_v29 = vsel %vm545_vm9, %v546_v26, %v544_v28  ;;  %v388_v7 = vmov (%p462_p9), %v1763_v7  ;;  %v402_v6 = vmov (%p462_p9), %v1761_v6  ;;  %vm434_vm9 = vcmp.eq.s32.totalorder (%p462_p9), %v422_v7, %v419_v6 }
 0x151   : >>> { %v548_v30 = vxor.u32 2147483648, %v547_v29  ;;  %v405_v7 = vmov (%p462_p9), %v1763_v7 }
 0x153   : >>> { %v549_v33 = vsel %vm538_vm10, %v547_v29, %v548_v30 }
 0x154   : >>> { %v550_v34 = vadd.f32 %v549_v33, %v537_v22 }
 0x156   : >>> { %1607 = vrcp.f32 %v550_v34 }
 0x160   : >>> { %v1608_v38 = vpop.eup %1607 }
 0x161   : >>> { %v558_v39 = vsel %vm557_vm11, 0.0, %v1608_v38 }
 0x162   : >>> { %v559_v40 = vmul.f32 %v558_v39, %v558_v39  ;;  %v563_v41 = vmul.f32 %v558_v39, %v531_v16 }
 0x164   : >>> { %v560_v42 = vadd.f32 1.0, %v559_v40  ;;  %v564_v43 = vsub.f32 %v529_v18, %v563_v41  ;;  %v566_v44 = vadd.f32 %v563_v41, %v533_v19 }
 0x166   : >>> { %1609 = vrsqrt.f32 %v560_v42  ;;  %568 = vst [vmem:[%s567_s22] sm:$0xff] %v564_v43  ;;  %570 = vst [vmem:[%s569_s29] sm:$0xff] %v566_v44  ;;  %s605_s22 = smov [#allocation31]  ;;  %s1817_s29 = smov [#allocation20] }
 0x167   : >>> { %v613_v53 = vld [vmem:[%s1817_s29] sm:$0xf] }
 0x170   : >>> { %v1610_v45 = vpop.eup %1609 }
 0x171   : >>> { %572 = vst [vmem:[%s571_s14] sm:$0xff] %v1610_v45  ;;  %v562_v46 = vmul.f32 %v1610_v45, %v558_v39  ;;  %s603_s14 = smov [#allocation32] }
 0x173   : >>> { %574 = vst [vmem:[%s573_s15] sm:$0xff] %v562_v46  ;;  %s1819_s15 = smov [#allocation21] }
 0x174   : >>> { %v614_v54 = vld [vmem:[%s1819_s15] sm:$0xf] }
 0x178   : >>> { %v576_v47 = vld [vmem:[%s575_s16] ss:$0 sm:$0xff]  ;;  %s1823_s16 = smov [#allocation23] }
 0x179   : >>> { %v585_v48 = vsel %vm584_vm12, %v576_v47, 0.0  ;;  %v616_v56 = vld [vmem:[%s1823_s16] sm:$0xf] }
 0x17a   : >>> { %586 = vadd.xlane.f32.xlu0 %v585_v48  ;;  %v591_v49 = vld [vmem:[%s590_s30] ss:$0 sm:$0xff]  ;;  %s1825_s30 = smov [#allocation12] }
 0x17b   : >>> { %v600_v50 = vsel %vm599_vm13, %v591_v49, 0.0  ;;  %v837_v57 = vld [vmem:[%s1825_s30] sm:$0xf] }
 0x17e   : >>> { %601 = vadd.xlane.f32.xlu0 %v600_v50 }
 0x207   : >>> { %v587_v51 = vpop.xlane.xlu0 %586 }
 0x208   : >>> { %589 = vst [vmem:[%s588_s21] sm:$0xff] %v587_v51  ;;  %s1829_s21 = smov [#allocation16] }
 0x209   : >>> { %v839_v59 = vld [vmem:[%s1829_s21] sm:$0xf] }
 0x20b   : >>> { %v602_v52 = vpop.xlane.xlu0 %601 }
 0x20c   : >>> { %604 = vst [vmem:[%s603_s14] sm:$0xff] %v602_v52  ;;  %s1853_s14 = smov [#allocation23] }
 0x20f   : >>> { %v606_v60 = vld [vmem:[%s605_s22] sm:$0xff]  ;;  %s1851_s22 = smov [#allocation22] }
 0x210   : >>> { %v830_v62 = vld [vmem:[%s829_s11] sm:$0xff]  ;;  %v617_v63 = vmul.f32 %v613_v53, %v606_v60  ;;  %v620_v0 = vmul.f32 %v614_v54, %v606_v60  ;;  %v624_v1 = vmul.f32 %v615_v55, %v606_v60  ;;  %v627_v2 = vmul.f32 %v616_v56, %v606_v60  ;;  %s1849_s11 = smov [#allocation12] }
 0x211   : >>> { %v841_v3 = vmul.f32 %v837_v57, %v830_v62  ;;  %v844_v4 = vmul.f32 %v838_v58, %v830_v62  ;;  %v848_v5 = vmul.f32 %v839_v59, %v830_v62  ;;  %v851_v8 = vmul.f32 %v840_v61, %v830_v62 }
 0x213   : >>> { %v608_v9 = vld [vmem:[%s607_s26] sm:$0xff]  ;;  %s635_s26 = smov [#allocation30] }
 0x214   : >>> { %v832_v10 = vld [vmem:[%s831_s25] sm:$0xff]  ;;  %v618_v11 = vmul.f32 %v615_v55, %v608_v9  ;;  %v621_v12 = vmul.f32 %v616_v56, %v608_v9  ;;  %v623_v13 = vmul.f32 %v613_v53, %v608_v9  ;;  %v626_v14 = vmul.f32 %v614_v54, %v608_v9  ;;  %s633_s25 = smov [#allocation29] }
 0x215   : >>> { %v842_v15 = vmul.f32 %v839_v59, %v832_v10  ;;  %v845_v16 = vmul.f32 %v840_v61, %v832_v10  ;;  %v847_v17 = vmul.f32 %v837_v57, %v832_v10  ;;  %v850_v18 = vmul.f32 %v838_v58, %v832_v10  ;;  %v634_v27 = vld [vmem:[%s633_s25] ss:$0 sm:$0xff]  ;;  %s662_s25 = smov [#allocation27] }
 0x216   : >>> { %v619_v19 = vsub.f32 %v617_v63, %v618_v11  ;;  %v622_v20 = vsub.f32 %v620_v0, %v621_v12  ;;  %v625_v21 = vadd.f32 %v624_v1, %v623_v13  ;;  %v628_v22 = vadd.f32 %v627_v2, %v626_v14  ;;  %v636_v28 = vld [vmem:[%s635_s26] ss:$0 sm:$0xff]  ;;  %s661_s26 = smov [#allocation20] }
 0x217   : >>> { %v843_v23 = vsub.f32 %v841_v3, %v842_v15  ;;  %v846_v24 = vsub.f32 %v844_v4, %v845_v16  ;;  %v849_v25 = vadd.f32 %v848_v5, %v847_v17  ;;  %v852_v26 = vadd.f32 %v851_v8, %v850_v18  ;;  %v669_v63 = vld [vmem:[%s662_s25] ss:$0 sm:$0xff]  ;;  %s905_s25 = sadd.s32 (%p462_p9), 1, %s1645_s17  }
 0x218   : >>> { %630 = vst [vmem:[%s1819_s15] sm:$0xf] %v622_v20  ;;  %632 = vst [vmem:[%s1823_s16] sm:$0xf] %v628_v22  ;;  %s1855_s15 = smov [#allocation20]  ;;  %s703_s16 = smov [#allocation28] }
 0x219   : >>> { %629 = vst [vmem:[%s1817_s29] sm:$0xf] %v619_v19  ;;  %631 = vst [vmem:[%s1821_s24] sm:$0xf] %v625_v21  ;;  %s1857_s24 = smov [#allocation16]  ;;  %s1865_s29 = smov [#allocation21]  ;;  %v710_v59 = vld [vmem:[%s703_s16] ss:$0 sm:$0xff] }
 0x21a   : >>> { %853 = vst [vmem:[%s1825_s30] sm:$0xf] %v843_v23  ;;  %854 = vst [vmem:[%s1827_s23] sm:$0xf] %v846_v24  ;;  %s1859_s23 = smov [#allocation14]  ;;  %s689_s30 = smov [#allocation22] }
 0x21b   : >>> { %855 = vst [vmem:[%s1829_s21] sm:$0xf] %v849_v25  ;;  %856 = vst [vmem:[%s1833_s27] sm:$0xf] %v852_v26  ;;  %s1863_s27 = smov [#allocation18]  ;;  %s702_s21 = smov [#allocation23] }
 0x21c   : >>> { %s805_s16 = smov [#allocation21]  ;;  %p458_p10 = scmp.ge.s32.totalorder (%p462_p9), %s905_s25, 15 }
 0x21d   : >> { %s2043_s17 = smov (%p462_p9), %s905_s25 }
 0x21f   : >>> { %v644_v30 = vld [vmem:[%s1853_s14] sm:$0xf] }
 0x220   : >>> { %v643_v29 = vld [vmem:[%s1851_s22] sm:$0xf]  ;;  %v652_v36 = vmul.f32 %v644_v30, %v636_v28  ;;  %v655_v42 = vmul.f32 %v644_v30, %v634_v27 }
 0x221   : >>> { %v641_v31 = vld [vmem:[%s1855_s15] sm:$0xf]  ;;  %v651_v35 = vmul.f32 %v643_v29, %v634_v27  ;;  %v654_v37 = vmul.f32 %v643_v29, %v636_v28 }
 0x222   : >>> { %v859_v32 = vld [vmem:[%s1849_s11] ss:$0 sm:$0xff]  ;;  %v1531_v34 = vld [vmem:[%s1849_s11 + $0x3] ss:$0 sm:$0xff]  ;;  %v645_v48 = vmul.f32 %v641_v31, %v634_v27  ;;  %v648_v49 = vmul.f32 %v641_v31, %v636_v28 }
 0x223   : >>> { %v1530_v33 = vld [vmem:[%s1849_s11 - $0x1] sm:$0xe]  ;;  %v1535_v45 = vld [vmem:[%s1859_s23 + $0x3] ss:$0 sm:$0xff]  ;;  %v653_v47 = vsub.f32 %v651_v35, %v652_v36  ;;  %v656_v53 = vadd.f32 %v655_v42, %v654_v37 }
 0x224   : >>> { %v866_v38 = vsel %vm789_vm14, %v859_v32, %v1530_v33  ;;  %v870_v39 = vld [vmem:[%s1857_s24] ss:$0 sm:$0xff]  ;;  %v1533_v40 = vld [vmem:[%s1857_s24 + $0x1] sm:$0x7] }
 0x225   : >>> { %v883_v41 = vld [vmem:[%s1859_s23] ss:$0 sm:$0xff]  ;;  %869 = vst [vmem:[%s1849_s11] sm:$0xf] %v866_v38  ;;  %v878_v43 = vsel %vm801_vm15, %v1531_v34, %v1533_v40  ;;  %v1537_v51 = vld [vmem:[%s1863_s27 + $0x1] sm:$0x7]  ;;  %659 = vst [vmem:[%s1851_s22] sm:$0xf] %v653_v47 }
 0x226   : >>> { %v1534_v44 = vld [vmem:[%s1859_s23 - $0x1] sm:$0xe]  ;;  %1532 = vst [vmem:[%s1849_s11 + $0x1] sm:$0x1] %v870_v39  ;;  %880 = vst [vmem:[%s1857_s24] sm:$0xf] %v878_v43  ;;  %v902_v54 = vsel %vm801_vm15, %v1535_v45, %v1537_v51  ;;  %s676_s11 = smov [#allocation21] }
 0x227   : >>> { %v894_v46 = vld [vmem:[%s1863_s27] ss:$0 sm:$0xff]  ;;  %v890_v50 = vsel %vm789_vm14, %v883_v41, %v1534_v44  ;;  %660 = vst [vmem:[%s1853_s14] sm:$0xf] %v656_v53  ;;  %s1907_s22 = smov [#allocation22]  ;;  %s1652_s14 = smov 1  }
 0x228   : >>> { %v642_v52 = vld [vmem:[%s1865_s29] sm:$0xf]  ;;  %893 = vst [vmem:[%s1859_s23] sm:$0xf] %v890_v50  ;;  %904 = vst [vmem:[%s1863_s27] sm:$0xf] %v902_v54  ;;  %s718_s24 = smov [#allocation21]  ;;  %s1910_s27 = smov [#allocation23] }
 0x229   : >>> { %v646_v55 = vmul.f32 %v642_v52, %v636_v28  ;;  %v649_v56 = vmul.f32 %v642_v52, %v634_v27  ;;  %1536 = vst [vmem:[%s1859_s23 + $0x1] sm:$0x1] %v894_v46  ;;  %s1653_s23 = smov 127  }
 0x22b   : >>> { %v647_v57 = vsub.f32 %v645_v48, %v646_v55  ;;  %v650_v58 = vadd.f32 %v649_v56, %v648_v49 }
 0x22c   : >>> { %v696_v60 = vld [vmem:[%s689_s30] sm:$0xf] }
 0x22d   : >>> { %657 = vst [vmem:[%s1855_s15] sm:$0xf] %v647_v57  ;;  %658 = vst [vmem:[%s1865_s29] sm:$0xf] %v650_v58  ;;  %v700_v61 = vsel %vm699_vm0, 0.0, %v696_v60  ;;  %s717_s15 = smov [#allocation20]  ;;  %s781_s29 = smov [#allocation20] }
 0x22e   : >>> { %v711_v62 = vld [vmem:[%s702_s21] sm:$0xf]  ;;  %701 = vst [vmem:[%s689_s30] sm:$0xf] %v700_v61  ;;  %s782_s30 = smov [#allocation22] }
 0x22f   : >>> { %v715_v0 = vsel %vm714_vm1, %v710_v59, %v711_v62 }
 0x230   : >>> { %716 = vst [vmem:[%s702_s21] sm:$0xf] %v715_v0  ;;  %s806_s21 = smov [#allocation23] }
 0x234   : >>> { %v670_v1 = vld [vmem:[%s661_s26] sm:$0xf] }
 0x235   : >>> { %v683_v2 = vld [vmem:[%s676_s11] sm:$0xf]  ;;  %v674_v3 = vsel %vm673_vm3, %v669_v63, %v670_v1 }
 0x236   : >>> { %v687_v4 = vsel %vm686_vm4, 0.0, %v683_v2  ;;  %675 = vst [vmem:[%s661_s26] sm:$0xf] %v674_v3  ;;  %v755_v5 = vld [vmem:[%s1907_s22] sm:$0xf]  ;;  %s370_s26 = smov (%p462_p9), [#allocation20] }
 0x237   : >>> { %688 = vst [vmem:[%s676_s11] sm:$0xf] %v687_v4  ;;  %756 = vrot.lane.b32.xlu0 %v755_v5, %s1652_s14  ;;  %v751_v11 = vld [vmem:[%s1910_s27] sm:$0xf]  ;;  %s389_s11 = smov (%p462_p9), [#allocation21] }
 0x238   : >>> { %v772_v12 = vld [vmem:[%s1910_s27] sm:$0xf] }
 0x239   : >>> { %v754_v30 = vld [vmem:[%s1907_s22] sm:$0xf] }
 0x23d   : >>> { %v723_v8 = vld [vmem:[%s717_s15] sm:$0xf] }
 0x23e   : >>> { %724 = vrot.lane.b32.xlu1 %v723_v8, %s1652_s14  ;;  %v719_v9 = vld [vmem:[%s718_s24] sm:$0xf] }
 0x23f   : >>> { %v740_v10 = vld [vmem:[%s718_s24] sm:$0xf] }
 0x240   : >>> { %v722_v18 = vld [vmem:[%s717_s15] sm:$0xf] }
 0x242   : >>> { %720 = vrot.lane.b32.xlu1 %v719_v9, %s1652_s14 }
 0x246   : >>> { %741 = vrot.lane.b32.xlu1 %v740_v10, %s1653_s23 }
 0x24a   : >>> { %752 = vrot.lane.b32.xlu1 %v751_v11, %s1652_s14  ;;  %s423_s14 = smov (%p462_p9), [#allocation23] }
 0x24e   : >>> { %773 = vrot.lane.b32.xlu1 %v772_v12, %s1653_s23 }
 0x2a9   : >>> { %v757_v20 = vpop.permute.xlu0 %756 }
 0x2aa   : >>> { %v761_v22 = vsel %vm728_vm5, %v755_v5, %v757_v20 }
 0x2b0   : >>> { %v725_v13 = vpop.permute.xlu1 %724 }
 0x2b1   : >>> { %v729_v14 = vsel %vm728_vm5, %v723_v8, %v725_v13 }
 0x2b4   : >>> { %v721_v15 = vpop.permute.xlu1 %720 }
 0x2b5   : >>> { %v733_v16 = vsel %vm732_vm6, %v721_v15, %v729_v14 }
 0x2b6   : >>> { %v739_v17 = vsel %vm1391_vm2, %v733_v16, 0.0 }
 0x2b7   : >>> { %747 = vst [vmem:[%s717_s15] sm:$0xf] %v739_v17 }
 0x2b8   : >>> { %v742_v19 = vpop.permute.xlu1 %741 }
 0x2b9   : >>> { %v746_v21 = vsel %vm745_vm7, %v722_v18, %v742_v19 }
 0x2ba   : >>> { %748 = vst [vmem:[%s718_s24] sm:$0xf] %v746_v21 }
 0x2bc   : >>> { %v753_v23 = vpop.permute.xlu1 %752 }
 0x2bd   : >>> { %v765_v24 = vsel %vm732_vm6, %v753_v23, %v761_v22 }
 0x2be   : >>> { %v783_v25 = vld [vmem:[%s781_s29] ss:$0 sm:$0xff]  ;;  %v1523_v27 = vld [vmem:[%s781_s29 + $0x3] ss:$0 sm:$0xff]  ;;  %v771_v29 = vsel %vm1391_vm2, %v765_v24, 0.0 }
 0x2bf   : >>> { %v1522_v26 = vld [vmem:[%s781_s29 - $0x1] sm:$0xe]  ;;  %779 = vst [vmem:[%s1907_s22] sm:$0xf] %v771_v29  ;;  %s406_s22 = smov (%p462_p9), [#allocation22] }
 0x2c0   : >>> { %v790_v28 = vsel %vm789_vm14, %v783_v25, %v1522_v26  ;;  %v774_v31 = vpop.permute.xlu1 %773 }
 0x2c1   : >>> { %793 = vst [vmem:[%s781_s29] sm:$0xf] %v790_v28  ;;  %v807_v32 = vld [vmem:[%s805_s16] ss:$0 sm:$0xff]  ;;  %v1527_v34 = vld [vmem:[%s805_s16 + $0x3] ss:$0 sm:$0xff]  ;;  %v778_v35 = vsel %vm745_vm7, %v754_v30, %v774_v31 }
 0x2c2   : >>> { %v1526_v33 = vld [vmem:[%s805_s16 - $0x1] sm:$0xe]  ;;  %780 = vst [vmem:[%s1910_s27] sm:$0xf] %v778_v35 }
 0x2c3   : >>> { %v814_v36 = vsel %vm789_vm14, %v807_v32, %v1526_v33 }
 0x2c4   : >>> { %817 = vst [vmem:[%s805_s16] sm:$0xf] %v814_v36 }
 0x2c6   : >>> { %v794_v37 = vld [vmem:[%s782_s30] ss:$0 sm:$0xff]  ;;  %v1525_v38 = vld [vmem:[%s782_s30 + $0x1] sm:$0x7] }
 0x2c7   : >>> { %1524 = vst [vmem:[%s781_s29 + $0x1] sm:$0x1] %v794_v37  ;;  %v802_v39 = vsel %vm801_vm15, %v1523_v27, %v1525_v38  ;;  %464 = sbr.rel (!%p462_p9) target bundleno = 279 (0x117), region = 462 }
 0x2c8   : >>> { %804 = vst [vmem:[%s782_s30] sm:$0xf] %v802_v39 }
 0x2c9   : >>> { %v818_v40 = vld [vmem:[%s806_s21] ss:$0 sm:$0xff]  ;;  %v1529_v41 = vld [vmem:[%s806_s21 + $0x1] sm:$0x7] }
 0x2ca   : >>> { %1528 = vst [vmem:[%s805_s16 + $0x1] sm:$0x1] %v818_v40  ;;  %v826_v42 = vsel %vm801_vm15, %v1527_v34, %v1529_v41 }
 0x2cb   : >>> { %828 = vst [vmem:[%s806_s21] sm:$0xf] %v826_v42 }
 0x2ce   : >> { %v376_v43 = vld [vmem:[%s370_s26] sm:$0xf] }
 0x2cf   : >> { %v377_v45 = vsel %vm1391_vm2, %v376_v43, 0.0  ;;  %v412_v47 = vld [vmem:[%s406_s22] sm:$0xf] }
 0x2d0   : >> { %v378_v49 = vmul.f32 %v377_v45, %v377_v45  ;;  %v413_v51 = vsel %vm1391_vm2, %v412_v47, 0.0 }
 0x2d1   : >> { %v395_v44 = vld [vmem:[%s389_s11] sm:$0xf]  ;;  %v414_v53 = vmul.f32 %v413_v51, %v413_v51 }
 0x2d2   : >> { %v396_v46 = vsel %vm1391_vm2, %v395_v44, 0.0  ;;  %v429_v48 = vld [vmem:[%s423_s14] sm:$0xf]  ;;  %v382_v56 = vsel %vm381_vm8, 0.0, %v378_v49 }
 0x2d3   : >> { %v397_v50 = vmul.f32 %v396_v46, %v396_v46  ;;  %v430_v52 = vsel %vm1391_vm2, %v429_v48, 0.0 }
 0x2d4   : >> { %v431_v55 = vmul.f32 %v430_v52, %v430_v52 }
 0x2d5   : >> { %v399_v54 = vadd.f32 %v397_v50, %v378_v49  ;;  %v398_v57 = vadd.f32 %v397_v50, %v382_v56 }
 0x2d6   : >> { %v435_v60 = vsel %vm434_vm9, 0.0, %v431_v55 }
 0x2d7   : >> { %v416_v58 = vadd.f32 %v414_v53, %v399_v54  ;;  %v415_v59 = vadd.f32 %v414_v53, %v398_v57 }
 0x2d9   : >> { %v437_v61 = vadd.f32 %v431_v55, %v416_v58  ;;  %v436_v62 = vadd.f32 %v435_v60, %v415_v59 }
 0x2db   : >> { %438 = vadd.xlane.f32.xlu0 %v437_v61 }
 0x2df   : >> { %446 = vadd.xlane.f32.xlu0 %v436_v62 }
 0x368   : >> { %v439_v63 = vpop.xlane.xlu0 %438 }
 0x369   : >> { %v440_v0 = vrot.slane %v439_v63, 4 }
 0x36b   : >> { %v441_v1 = vadd.f32 %v440_v0, %v439_v63 }
 0x36c   : >> { %v447_v2 = vpop.xlane.xlu0 %446 }
 0x36d   : >> { %v442_v3 = vrot.slane %v441_v1, 2  ;;  %v448_v4 = vrot.slane %v447_v2, 4 }
 0x36f   : >> { %v449_v5 = vadd.f32 %v448_v4, %v447_v2  ;;  %v443_v8 = vadd.f32 %v442_v3, %v441_v1 }
 0x371   : >> { %v450_v9 = vrot.slane %v449_v5, 2  ;;  %v444_v11 = vrot.slane %v443_v8, 1 }
 0x373   : >> { %v451_v10 = vadd.f32 %v450_v9, %v449_v5  ;;  %v445_v14 = vadd.f32 %v444_v11, %v443_v8 }
 0x375   : >> { %v452_v12 = vrot.slane %v451_v10, 1 }
 0x377   : >> { %v453_v13 = vadd.f32 %v452_v12, %v451_v10 }
 0x379   : >> { %1556 = vpush %v453_v13 }
 0x37a   : >> { %1558 = vpush %v445_v14 }
 0x3aa   : >> { %s1557_s20 = spop %1556 }
 0x3ab   : >> { %s1559_s15 = spop %1558 }
 0x3ac   : >> { %s456_s24 = smul.f32 1e-10, %s1559_s15 }
 0x3ae   : >> { %p457_p11 = scmp.le.f32.partialorder %s1557_s20, %s456_s24 }
 0x3b0   : >> { %p459_p12 = por %p458_p10, %p457_p11 }
 0x3b2   : > { %907 = sbr.rel (!%p459_p12) target bundleno = 278 (0x116), region = 473 }
 0x3b9 PF: > { %s912_s23 = smov [#allocation20]  ;;  %v916_v6 = vmov %v1761_v6  ;;  %v919_v7 = vmov %v1763_v7  ;;  %v967_v15 = vld [vmem:[#allocation12] sm:$0xf]  ;;  %v973_v16 = vld [vmem:[#allocation14] sm:$0xf]  ;;  %s2044_s17 = scalar_lea.vmem [#allocation13], %s1757_s28 }
 0x3ba   : > { %v936_v6 = vmov %v1761_v6  ;;  %v939_v7 = vmov %v1763_v7  ;;  %v920_v17 = vld [vmem:[%s912_s23] sm:$0xf]  ;;  %vm923_vm10 = vcmp.eq.s32.totalorder %v919_v7, %v916_v6  ;;  %969 = vst [vmem:[%s2044_s17] sm:$0xf] %v967_v15  ;;  %s2045_s27 = scalar_lea.vmem [#allocation15], %s1757_s28  ;;  %s932_s29 = smov [#allocation23] }
 0x3bb   : > { %vm943_vm11 = vcmp.eq.s32.totalorder %v939_v7, %v936_v6  ;;  %975 = vst [vmem:[%s2045_s27] sm:$0xf] %v973_v16  ;;  %v979_v18 = vld [vmem:[#allocation16] sm:$0xf]  ;;  %v924_v19 = vsel %vm923_vm10, %v920_v17, 0.0  ;;  %s2046_s16 = scalar_lea.vmem [#allocation17], %s1757_s28  ;;  %s2047_s30 = scalar_lea.vmem [#allocation19], %s1757_s28 }
 0x3bc   : > { %981 = vst [vmem:[%s2046_s16] sm:$0xf] %v979_v18  ;;  %v985_v20 = vld [vmem:[#allocation18] sm:$0xf]  ;;  %v925_v21 = vrot.slane %v924_v19, 4  ;;  %v940_v22 = vld [vmem:[%s932_s29] sm:$0xf] }
 0x3bd   : > { %987 = vst [vmem:[%s2047_s30] sm:$0xf] %v985_v20  ;;  %v944_v23 = vsel %vm943_vm11, %v940_v22, 0.0  ;;  %s908_s21 = sand.u32 7, %s1720_s12   ;;  %s2048_s11 = scalar_lea.vmem [#allocation9], %s1759_s18 }
 0x3be   : > { %v926_v24 = vadd.f32 %v925_v21, %v924_v19  ;;  %v945_v25 = vrot.slane %v944_v23, 4  ;;  %s909_s25 = scalar_lea.vmem [#allocation8], %s908_s21  ;;  %s911_s26 = scalar_lea.vmem [#allocation10], %s908_s21 }
 0x3bf   : > { %s913_s25 = smov %s909_s25  ;;  %s933_s26 = smov %s911_s26 }
 0x3c0   : > { %v927_v26 = vrot.slane %v926_v24, 2  ;;  %v946_v6 = vadd.f32 %v945_v25, %v944_v23  ;;  %s2049_s22 = scalar_lea.vmem [#allocation11], %s1759_s18  ;;  %s1015_s14 = sshrl.u32 (%p1734_p3), %s1720_s12, 3 }
 0x3c1   : > { %s2050_s20 = scalar_lea.vmem (%p1734_p3), [#allocation9], %s1759_s18  ;;  %s1544_s15 = sshll.u32 (%p1734_p3), %s1015_s14, 2 }
 0x3c2   : > { %v928_v7 = vadd.f32 %v927_v26, %v926_v24  ;;  %v947_v27 = vrot.slane %v946_v6, 2  ;;  %s1017_s17 = scalar_lea.vmem (%p1734_p3), %s2035_s4, %s1544_s15 }
 0x3c4   : > { %v929_v28 = vrot.slane %v928_v7, 1  ;;  %v948_v29 = vadd.f32 %v947_v27, %v946_v6 }
 0x3c6   : > { %v930_v30 = vadd.f32 %v929_v28, %v928_v7  ;;  %v949_v31 = vrot.slane %v948_v29, 1 }
 0x3c8   : > { %931 = vst [vmem:[%s913_s25] sm:$0x1] %v930_v30  ;;  %v950_v32 = vadd.f32 %v949_v31, %v948_v29 }
 0x3ca   : > { %951 = vst [vmem:[%s933_s26] sm:$0x1] %v950_v32 }
 0x3cc   : > { %1014 = sbr.rel (!%p1734_p3) target bundleno = 985 (0x3d9), region = 158 }
 0x3cf   : > { %v955_v33 = vld [vmem:[#allocation8] sm:$0xf] }
 0x3d0   : > { %957 = vst [vmem:[%s2048_s11] sm:$0xf] %v955_v33 }
 0x3d1   : > { %v961_v34 = vld [vmem:[#allocation10] sm:$0xf] }
 0x3d2   : > { %963 = vst [vmem:[%s2049_s22] sm:$0xf] %v961_v34 }
 0x3d7   : > { %v1033_v35 = vld [vmem:[%s2050_s20] sm:$0xf] }
 0x3d8   : > { %1034 = vst [vmem:[%s1017_s17] sm:$0xf] %v1033_v35 }
 0x3d9 PF: > { %1051 = sbr.rel (!%p1734_p3) target bundleno = 993 (0x3e1), region = 192  ;;  %s1052_s27 = sshrl.u32 (%p1734_p3), %s1720_s12, 3 }
 0x3da   : > { %s2051_s29 = scalar_lea.vmem (%p1734_p3), [#allocation11], %s1759_s18  ;;  %s1545_s16 = sshll.u32 (%p1734_p3), %s1052_s27, 2 }
 0x3db   : > { %s1054_s25 = scalar_lea.vmem (%p1734_p3), %s2036_s5, %s1545_s16 }
 0x3df   : > { %v1070_v36 = vld [vmem:[%s2051_s29] sm:$0xf] (%p1734_p3) }
 0x3e0   : > { %1071 = vst [vmem:[%s1054_s25] sm:$0xf] %v1070_v36 }
 0x3e1 PF: > { %s1546_s26 = sshll.u32 %s1720_s12, 2  ;;  %s2052_s19 = scalar_lea.vmem [#allocation13], %s1757_s28 }
 0x3e2   : > { %v1103_v37 = vld [vmem:[%s2052_s19] sm:$0xf]  ;;  %s2053_s11 = scalar_lea.vmem [#allocation15], %s1757_s28  ;;  %s1087_s14 = scalar_lea.vmem %s2037_s6, %s1546_s26 }
 0x3e3   : > { %v1136_v38 = vld [vmem:[%s2053_s11] sm:$0xf]  ;;  %s1120_s24 = scalar_lea.vmem %s2038_s7, %s1546_s26  ;;  %s2054_s23 = scalar_lea.vmem [#allocation17], %s1757_s28  ;;  %1104 = vst [vmem:[%s1087_s14] sm:$0xf] %v1103_v37 }
 0x3e4   : > { %v1169_v39 = vld [vmem:[%s2054_s23] sm:$0xf]  ;;  %s2055_s17 = scalar_lea.vmem [#allocation19], %s1757_s28  ;;  %1137 = vst [vmem:[%s1120_s24] sm:$0xf] %v1136_v38  ;;  %s1153_s29 = scalar_lea.vmem %s2039_s8, %s1546_s26 }
 0x3e5   : > { %v1202_v40 = vld [vmem:[%s2055_s17] sm:$0xf]  ;;  %s1186_s21 = scalar_lea.vmem %s2040_s9, %s1546_s26  ;;  %1170 = vst [vmem:[%s1153_s29] sm:$0xf] %v1169_v39 }
 0x3e6   : > { %1203 = vst [vmem:[%s1186_s21] sm:$0xf] %v1202_v40 }
 0x3e7 PF: > { %s2056_s25 = sld [smem:[#allocation33_spill]]  ;;  %p13_p13 = scmp.ge.s32.totalorder %s1723_s13, 6  }
 0x3e8   : > { %s2057_s30 = smov %s1637_s10  ;;  %s2059_s11 = smov %s1723_s13 }
 0x3e9   :  { %15 = sbr.rel (!%p13_p13) target bundleno = 2 (0x2), region = 484 }
 0x3ed   : > { %s2058_s10 = smov %s2056_s25 }

// kernel: group_whitening_1d.2
= control target key start
LH: loop header
LB: loop body
LE: loop exit
PB: predicated region body
PF: predicated region fallthrough
CT: control target
= control target key end

     0   :  { %8 = vsyncpa [#allocation3], 0  ;;  %s256_s9 = smov [#allocation2]   ;;  %s344_s0 = inlined_call_operand.hbm [shape: f32[16,32], index: 0, kind: input, shape index: {}]   ;;  %s345_s1 = inlined_call_operand.vmem [shape: f32[1,32], index: 1, kind: output, shape index: {0}]   ;;  %s346_s2 = inlined_call_operand.vmem [shape: f32[32,32], index: 2, kind: output, shape index: {1}]  }
   0x1   :  { %s14_s10 = sshll.u32 %s256_s9, 4  ;;  %s232_s13 = scalar_lea.hbm %s344_s0, 256  ;;  %s15_s10 = int_to_ptr.vmem [resolvable:$true] %s14_s10 }
   0x2   :  { %p233_p0 = scmp.ne.s32.totalorder %s344_s0, %s232_s13  ;;  %p236_p1 = scmp.lt.u32.totalorder %s232_s13, %s344_s0 }
   0x4   :  { %p238_p2 = pnand %p236_p1, %p233_p0 }
   0x6   :  { %241 = shalt.err (!%p238_p2)
}
   0x7   :  { %s242_s18 = scalar_lea.vmem %s15_s10, 256  ;;  %p247_p4 = scmp.lt.s32.totalorder %s15_s10, %s15_s10 }
   0x8   :  { %p243_p3 = scmp.ne.s32.totalorder %s15_s10, %s242_s18  ;;  %p248_p5 = scmp.lt.s32.totalorder %s242_s18, %s242_s18 }
   0xa   :  { %p249_p6 = por %p248_p5, %p247_p4 }
   0xc   :  { %p250_p7 = pnand %p249_p6, %p243_p3 }
   0xe   :  { %253 = shalt.err (!%p250_p7)
}
   0xf   :  { %s257_s19 = smov 128   ;;  %s258_s20 = smov 8  }
  0x10   :  { %20 = dma.hbm_to_vmem [thread:$0]  %s344_s0, 256, %s15_s10, [#allocation3], %s257_s19, %s257_s19, %s258_s20  }
  0x11   :  { %254 = dma.done.wait [#allocation3], 256  }
  0x12   :  { %255 = vsyncadd [#allocation3], 4294967040  ;;  %vm30_vm0 = vcmask 261120   ;;  %vm28_vm1 = vcmask 253952   ;;  %v259_v0 = vmov 0.0   ;;  %v35_v1 = vld [vmem:[#allocation2] sm:$0xff] }
  0x13   :  { %29 = vst.msk [vmem:[%s345_s1] sm:$0x1] %vm28_vm1, %v259_v0  ;;  %v36_v2 = vld [vmem:[#allocation2 + $0x8] sm:$0xff]  ;;  %55 = vxpose.xlu0.b32.start [1/2] (short) (narrow) %v35_v1, 32  ;;  %v39_v3 = vsel %vm30_vm0, %v35_v1, 0.0  ;;  %vm87_vm2 = vcmask 130048  }
  0x14   :  { %31 = vst.msk [vmem:[%s346_s2] sm:$0xff] %vm30_vm0, %v259_v0  ;;  %32 = vst.msk [vmem:[%s346_s2 + $0x8] sm:$0xff] %vm30_vm0, %v259_v0  ;;  %v40_v4 = vsel %vm30_vm0, %v36_v2, 0.0  ;;  %v222_v5 = vpack.c.bf16 %v36_v2, %v35_v1 }
  0x15   :  { %33 = vst.msk [vmem:[%s346_s2 + $0x10] sm:$0xff] %vm30_vm0, %v259_v0  ;;  %34 = vst.msk [vmem:[%s346_s2 + $0x18] sm:$0xff] %vm30_vm0, %v259_v0  ;;  %v41_v6 = vadd.f32 %v40_v4, %v39_v3 }
  0x16   :  { %223 = vmatprep.subr.bf16.mxu0 %v222_v5  ;;  %226 = vmatprep.subr.bf16.mxu1 %v222_v5 }
  0x17   :  { %v42_v7 = vrot.slane %v41_v6, 4  ;;  %225 = vmatpush3.bf16.msra.mxu0 %v222_v5  ;;  %227 = vmatpush3.bf16.msra.mxu1 %v222_v5 }
  0x18   :  { %56 = vxpose.xlu0.b32.end [2/2] (short) (narrow) %v36_v2, 32 }
  0x19   :  { %v43_v8 = vadd.f32 %v42_v7, %v41_v6 }
  0x1a   :  { %v37_v12 = vld [vmem:[%s345_s1] sm:$0x1] }
  0x1b   :  { %v44_v9 = vrot.slane %v43_v8, 2  ;;  %v52_v19 = vld [vmem:[%s346_s2 + $0x8] sm:$0xff]  ;;  %v51_v20 = vld [vmem:[%s346_s2] sm:$0xff] }
  0x1c   :  { %v54_v25 = vld [vmem:[%s346_s2 + $0x18] sm:$0xff]  ;;  %v53_v26 = vld [vmem:[%s346_s2 + $0x10] sm:$0xff] }
  0x1d   :  { %v45_v10 = vadd.f32 %v44_v9, %v43_v8 }
  0x1f   :  { %v46_v11 = vrot.slane %v45_v10, 1 }
  0x21   :  { %v47_v13 = vadd.f32 %v46_v11, %v45_v10 }
  0x23   :  { %v48_v14 = vadd.f32 %v47_v13, %v37_v12 }
  0x25   :  { %50 = vst.msk [vmem:[%s345_s1] sm:$0x1] %vm28_vm1, %v48_v14 }
  0x94   :  { %v71_v15 = vpop.trf.xlu0 }
  0x95   :  { %216 = vmatprep.mubr.msk.f32.mxu0 %vm87_vm2, %v71_v15 }
  0x98   :  { %v72_v16 = vpop.trf.xlu0 }
  0x99   :  { %217 = vmatmul.mubr.msk.f32.vlgmr.msra.gmra.mrb[0].mxu0 %vm87_vm2, %v72_v16 }
  0x9c   :  { %v73_v17 = vpop.trf.xlu0 }
  0x9d   :  { %219 = vmatprep.mubr.msk.f32.mxu1 %vm87_vm2, %v73_v17 }
  0xa0   :  { %v74_v18 = vpop.trf.xlu0 }
  0xa1   :  { %220 = vmatmul.mubr.msk.f32.vlgmr.msra.gmra.mrb[0].mxu1 %vm87_vm2, %v74_v18 }
 0x16c   :  { %v218_v21 = vpop.f32.mrb[0].mxu0 }
 0x16d   :  { %v186_v22 = vadd.f32 %v218_v21, %v52_v19  ;;  %v166_v23 = vpop.f32.mrb[1].mxu0 }
 0x16e   :  { %v185_v24 = vadd.f32 %v166_v23, %v51_v20 }
 0x16f   :  { %190 = vst.msk [vmem:[%s346_s2 + $0x8] sm:$0xff] %vm30_vm0, %v186_v22 }
 0x170   :  { %189 = vst.msk [vmem:[%s346_s2] sm:$0xff] %vm30_vm0, %v185_v24 }
 0x174   :  { %v221_v27 = vpop.f32.mrb[0].mxu1 }
 0x175   :  { %v188_v28 = vadd.f32 %v221_v27, %v54_v25  ;;  %v176_v29 = vpop.f32.mrb[1].mxu1 }
 0x176   :  { %v187_v30 = vadd.f32 %v176_v29, %v53_v26 }
 0x177   :  { %192 = vst.msk [vmem:[%s346_s2 + $0x18] sm:$0xff] %vm30_vm0, %v188_v28 }
 0x178   :  { %191 = vst.msk [vmem:[%s346_s2 + $0x10] sm:$0xff] %vm30_vm0, %v187_v30 }
 0x179   :  { %201 = vsyncpa [#allocation3], 1 }

// kernel: group_whitening_1d.3
= control target key start
LH: loop header
LB: loop body
LE: loop exit
PB: predicated region body
PF: predicated region fallthrough
CT: control target
= control target key end

     0   :  { %vm30_vm0 = vcmask 261120   ;;  %s245_s0 = inlined_call_operand.vmem [shape: f32[16,32], index: 0, kind: input, shape index: {}]   ;;  %s246_s1 = inlined_call_operand.vmem [shape: f32[1,32], index: 1, kind: input, shape index: {}]   ;;  %s247_s2 = inlined_call_operand.vmem [shape: f32[32,32], index: 2, kind: input, shape index: {}]   ;;  %s248_s3 = inlined_call_operand.hbm [shape: f32[16,32], index: 3, kind: output, shape index: {}]  }
   0x1   :  { %v26_v0 = vld [vmem:[%s247_s2] sm:$0xff]  ;;  %v27_v1 = vld [vmem:[%s247_s2 + $0x8] sm:$0xff]  ;;  %v28_v2 = vld [vmem:[%s247_s2 + $0x10] sm:$0xff] }
   0x2   :  { %v150_v3 = vpack.c.bf16 %v27_v1, %v26_v0  ;;  %v29_v4 = vld [vmem:[%s247_s2 + $0x18] sm:$0xff]  ;;  %v15_v5 = vld [vmem:[%s245_s0] sm:$0xff] }
   0x3   :  { %v154_v6 = vpack.c.bf16 %v29_v4, %v28_v2  ;;  %v130_v7 = vld [vmem:[%s246_s1] ss:$0 sm:$0xff] }
   0x4   :  { %8 = vsyncpa [#allocation3], 0  ;;  %151 = vmatprep.subr.bf16.mxu0 %v150_v3  ;;  %v24_v8 = vsub.f32 %v15_v5, %v130_v7  ;;  %v16_v9 = vld [vmem:[%s245_s0 + $0x8] sm:$0xff]  ;;  %s185_s2 = smov [#allocation2]  }
   0x5   :  { %153 = vmatpush3.bf16.msra.mxu0 %v150_v3  ;;  %v25_v10 = vsub.f32 %v16_v9, %v130_v7  ;;  %s119_s26 = sshll.u32 %s185_s2, 4  ;;  %s120_s26 = int_to_ptr.vmem [resolvable:$true] %s119_s26 }
   0x6   :  { %155 = vmatprep.subr.bf16.mxu0 %v154_v6  ;;  %147 = vmatprep.mubr.msk.f32.mxu0 %vm30_vm0, %v24_v8  ;;  %s161_s1 = scalar_lea.vmem %s120_s26, 256  ;;  %p166_p1 = scmp.lt.s32.totalorder %s120_s26, %s120_s26 }
   0x7   :  { %p162_p0 = scmp.ne.s32.totalorder %s120_s26, %s161_s1  ;;  %p167_p2 = scmp.lt.s32.totalorder %s161_s1, %s161_s1 }
   0x9   :  { %157 = vmatpush3.bf16.msra.mxu0 %v154_v6  ;;  %p168_p3 = por %p167_p2, %p166_p1 }
   0xb   :  { %p169_p4 = pnand %p168_p3, %p162_p0 }
   0xc   :  { %148 = vmatmul.mubr.msk.f32.vlgmr.msra.gmra.mrb[0].mxu0 %vm30_vm0, %v25_v10 }
  0xdf   :  { %v149_v11 = vpop.f32.mrb[0].mxu0 }
  0xe0   :  { %113 = vst.msk [vmem:[#allocation2 + $0x8] sm:$0xff] %vm30_vm0, %v149_v11  ;;  %v103_v12 = vpop.f32.mrb[1].mxu0 }
  0xe1   :  { %112 = vst.msk [vmem:[#allocation2] sm:$0xff] %vm30_vm0, %v103_v12 }
  0xe2   :  { %172 = shalt.err (!%p169_p4)
}
  0xe3   :  { %s173_s28 = scalar_lea.hbm %s248_s3, 256 }
  0xe4   :  { %p174_p5 = scmp.ne.s32.totalorder %s248_s3, %s173_s28  ;;  %p177_p6 = scmp.lt.u32.totalorder %s173_s28, %s248_s3 }
  0xe6   :  { %p179_p7 = pnand %p177_p6, %p174_p5 }
  0xe8   :  { %182 = shalt.err (!%p179_p7)
}
  0xe9   :  { %s186_s6 = smov 128   ;;  %s187_s7 = smov 8  }
  0xea   :  { %125 = dma.vmem_to_hbm [thread:$0]  %s120_s26, 256, %s248_s3, [#allocation3], %s186_s6, %s186_s6, %s187_s7  }
  0xeb   :  { %183 = dma.done.wait [#allocation3], 256  }
  0xec   :  { %184 = vsyncadd [#allocation3], 4294967040 }
  0xed   :  { %129 = vsyncpa [#allocation3], 1 }

</bundles_post_ra>
